<compile_context>
chip_gen: v5e
topology: v5e:2x2
jax: 0.10.0
libtpu: 0.0.40
codegen_flags: <defaults>
</compile_context>

<pallas_src>
import functools

import numpy as np
import jax
import jax.numpy as jnp
from jax.experimental import pallas as pl
from jax.experimental.pallas import tpu as pltpu

KSIZE = 7
PAD = 3


# ----------------------------------------------------------------------------
# Host-side precomputation (done once and cached -- not per call)
# ----------------------------------------------------------------------------
def _bilinear_matrix(in_size, out_size):
    """(out_size, in_size) bilinear-interp matrix, PyTorch align_corners=False."""
    i = np.arange(out_size, dtype=np.float64)
    scale = in_size / out_size
    src = scale * (i + 0.5) - 0.5
    src = np.maximum(src, 0.0)
    i0 = np.minimum(np.floor(src).astype(np.int64), in_size - 1)
    i1 = np.minimum(i0 + 1, in_size - 1)
    lam = src - i0
    R = np.zeros((out_size, in_size), dtype=np.float32)
    R[np.arange(out_size), i0] += (1.0 - lam).astype(np.float32)
    R[np.arange(out_size), i1] += lam.astype(np.float32)
    return R


@functools.lru_cache(maxsize=None)
def _upsample_matrix(in_hw, out_hw):
    """(h*w, H*W) bf16 matrix so that flat_out = flat_in @ U == bilinear resize."""
    h, w = in_hw
    H, W = out_hw
    Rh = _bilinear_matrix(h, H)                  # (H, h)
    Rw = _bilinear_matrix(w, W)                  # (W, w)
    U = np.kron(Rh, Rw).T                        # (h*w, H*W)
    return jnp.asarray(np.ascontiguousarray(U), dtype=jnp.bfloat16)


def _conv_matrix(w4d, H, W):
    """(2*H*W, H*W) bf16 matrix: 7x7 conv (pad=3) of the (avg, max) maps becomes a
       single MXU matmul  logits = [avg | max] @ K_stacked."""
    w = np.asarray(w4d, dtype=np.float32).reshape(2, KSIZE, KSIZE)
    S = H * W
    K = np.zeros((2, S, S), dtype=np.float32)
    for c in range(2):
        for ky in range(KSIZE):
            dy = ky - PAD
            Y = np.arange(max(0, -dy), min(H, H - dy))
            for kx in range(KSIZE):
                dx = kx - PAD
                X = np.arange(max(0, -dx), min(W, W - dx))
                if Y.size == 0 or X.size == 0:
                    continue
                q = (Y[:, None] * W + X[None, :]).ravel()                 # output pixel
                p = ((Y[:, None] + dy) * W + (X[None, :] + dx)).ravel()   # input pixel
                K[c, p, q] = w[c, ky, kx]
    K_stacked = np.concatenate([K[0], K[1]], axis=0)                      # (2S, S)
    return jnp.asarray(K_stacked, dtype=jnp.bfloat16)


def precompute_spatial_attention_params(conv_weights, spatial_shapes):
    """conv_weights: three (1,2,7,7) arrays (level1, level2, level3).
       spatial_shapes: ((H1,W1),(H2,W2),(H3,W3))."""
    (H1, W1), (H2, W2), (H3, W3) = spatial_shapes
    w1, w2, w3 = conv_weights
    return dict(
        K1=_conv_matrix(w1, H1, W1),
        K2=_conv_matrix(w2, H2, W2),
        K3=_conv_matrix(w3, H3, W3),
        U32=_upsample_matrix((H3, W3), (H2, W2)),
        U21=_upsample_matrix((H2, W2), (H1, W1)),
    )


# ----------------------------------------------------------------------------
# One fused kernel: level 3 -> level 2 -> level 1 (flattened H*W lane axis)
# ----------------------------------------------------------------------------
def _fused_kernel(mi1_ref, mi2_ref, mi3_ref,
                  msff1_ref, msff2_ref, msff3_ref,
                  k1_ref, k2_ref, k3_ref, u32_ref, u21_ref,
                  out1_ref, out2_ref, out3_ref,
                  cat_ref):
    def attention(mi_ref, k_ref):
        # sigmoid(conv7x7([mean_c, max_c])) for the whole batch block, flat HW space.
        x = mi_ref[...]                                      # (B, C, S) f32
        s = x.shape[-1]
        avg = jnp.mean(x, axis=1)                            # (B, S)
        mx = jnp.max(x, axis=1)                              # (B, S)
        # Stage [avg | max] lane-contiguously so the conv is ONE MXU matmul
        # against the stacked (2S, S) conv matrix (no unaligned concat needed).
        cat_ref[:, 0:s] = avg
        cat_ref[:, s:2 * s] = mx
        lhs = cat_ref[:, 0:2 * s].astype(jnp.bfloat16)       # (B, 2S) bf16
        logits = jnp.dot(lhs, k_ref[...],
                         preferred_element_type=jnp.float32)  # (B, S) f32
        # sigmoid = 1 / (1 + exp(-logits)); the divide rides the EUP slot.
        return pl.reciprocal(1.0 + jnp.exp(-logits), approx=True)

    def upsample(m, u_ref):
        # Bilinear resize (align_corners=False) as a matmul in flattened space.
        return jnp.dot(m.astype(jnp.bfloat16), u_ref[...],
                       preferred_element_type=jnp.float32)

    # --- level 3 (coarsest) ---------------------------------------------------
    m3 = attention(mi3_ref, k3_ref)                          # (B, S3)
    out3_ref[...] = msff3_ref[...] * m3[:, None, :]
    # --- level 2 ----------------------------------------------------------------
    m2 = upsample(m3, u32_ref) * attention(mi2_ref, k2_ref)  # (B, S2)
    out2_ref[...] = msff2_ref[...] * m2[:, None, :]
    # --- level 1 (finest) -------------------------------------------------------
    m1 = upsample(m2, u21_ref) * attention(mi1_ref, k1_ref)  # (B, S1)
    out1_ref[...] = msff1_ref[...] * m1[:, None, :]


def spatial_attention_module(msff1, msff2, msff3, MI, params, *, batch_block=8):
    mi1, mi2, mi3 = MI
    N, C = msff1.shape[:2]
    S1 = msff1.shape[2] * msff1.shape[3]
    S2 = msff2.shape[2] * msff2.shape[3]
    S3 = msff3.shape[2] * msff3.shape[3]

    flat = lambda a: a.reshape(a.shape[0], a.shape[1], -1)   # (N,C,H,W)->(N,C,H*W)
    mi1f, mi2f, mi3f = flat(mi1), flat(mi2), flat(mi3)
    ms1f, ms2f, ms3f = flat(msff1), flat(msff2), flat(msff3)

    K1, K2, K3 = params["K1"], params["K2"], params["K3"]
    U32, U21 = params["U32"], params["U21"]

    # Batch several N rows per grid step to amortize per-step overhead; remaining
    # grid steps (N > batch_block) are marked "parallel" for v7x's two TensorCores.
    B = min(N, batch_block)
    grid = (pl.cdiv(N, B),)

    batch_spec = lambda c, s: pl.BlockSpec((B, c, s), lambda n: (n, 0, 0))
    shared_spec = lambda r, c: pl.BlockSpec((r, c), lambda n: (0, 0))

    elems = N * C * (S1 + S2 + S3)
    flops = 2 * N * (2 * S1 * S1 + 2 * S2 * S2 + 2 * S3 * S3   # conv matmuls
                     + S3 * S2 + S2 * S1)                      # upsample matmuls
    flops += 4 * elems                                         # reductions + multiplies
    bytes_accessed = (3 * 4 * elems                            # MI + msff in, outs (f32)
                      + 2 * (2 * S1 * S1 + 2 * S2 * S2 + 2 * S3 * S3
                             + S3 * S2 + S2 * S1))             # K / U (bf16)
    cost = pl.CostEstimate(flops=int(flops),
                           transcendentals=int(N * (S1 + S2 + S3)),
                           bytes_accessed=int(bytes_accessed))

    out1, out2, out3 = pl.pallas_call(
        _fused_kernel,
        out_shape=(jax.ShapeDtypeStruct((N, C, S1), jnp.float32),
                   jax.ShapeDtypeStruct((N, C, S2), jnp.float32),
                   jax.ShapeDtypeStruct((N, C, S3), jnp.float32)),
        grid=grid,
        in_specs=[
            batch_spec(C, S1), batch_spec(C, S2), batch_spec(C, S3),     # MI levels
            batch_spec(C, S1), batch_spec(C, S2), batch_spec(C, S3),     # msff levels
            shared_spec(2 * S1, S1),                                     # K1 (bf16)
            shared_spec(2 * S2, S2),                                     # K2
            shared_spec(2 * S3, S3),                                     # K3
            shared_spec(S3, S2),                                         # U32
            shared_spec(S2, S1),                                         # U21
        ],
        out_specs=(batch_spec(C, S1), batch_spec(C, S2), batch_spec(C, S3)),
        scratch_shapes=[pltpu.VMEM((B, 2 * S1), jnp.float32)],           # [avg|max] slab
        compiler_params=pltpu.CompilerParams(dimension_semantics=("parallel",)),
        cost_estimate=cost,
    )(mi1f, mi2f, mi3f, ms1f, ms2f, ms3f, K1, K2, K3, U32, U21)

    return (out1.reshape(msff1.shape),
            out2.reshape(msff2.shape),
            out3.reshape(msff3.shape))


# ----------------------------------------------------------------------------
# Plain-JAX reference (sanity check of the Pallas lowering)
# ----------------------------------------------------------------------------
def _sa_ref(x, w4d):
    avg = jnp.mean(x, axis=1, keepdims=True)
    mx = jnp.max(x, axis=1, keepdims=True)
    f = jnp.concatenate([avg, mx], axis=1)
    y = jax.lax.conv_general_dilated(f, w4d, (1, 1), [(PAD, PAD), (PAD, PAD)],
                                     dimension_numbers=("NCHW", "OIHW", "NCHW"))
    return jax.nn.sigmoid(y)


def _module_ref(msff1, msff2, msff3, MI, weights4d):
    w1, w2, w3 = weights4d
    mi1, mi2, mi3 = MI
    M3 = _sa_ref(mi3, w3)
    rh2 = jnp.asarray(_bilinear_matrix(mi3.shape[2], mi2.shape[2]))
    rw2 = jnp.asarray(_bilinear_matrix(mi3.shape[3], mi2.shape[3]))
    M2 = jnp.einsum("nchw,Hh,Ww->ncHW", M3, rh2, rw2) * _sa_ref(mi2, w2)
    rh1 = jnp.asarray(_bilinear_matrix(mi2.shape[2], mi1.shape[2]))
    rw1 = jnp.asarray(_bilinear_matrix(mi2.shape[3], mi1.shape[3]))
    M1 = jnp.einsum("nchw,Hh,Ww->ncHW", M2, rh1, rw1) * _sa_ref(mi1, w1)
    return msff1 * M1, msff2 * M2, msff3 * M3


if __name__ == "__main__":
    key = jax.random.PRNGKey(0)
    ks = jax.random.split(key, 9)
    N, C = 2, 4
    H1 = W1 = 16
    H2 = W2 = 8
    H3 = W3 = 4

    mi1 = jax.random.normal(ks[0], (N, C, H1, W1), jnp.float32)
    mi2 = jax.random.normal(ks[1], (N, C, H2, W2), jnp.float32)
    mi3 = jax.random.normal(ks[2], (N, C, H3, W3), jnp.float32)
    msff1 = jax.random.normal(ks[3], (N, C, H1, W1), jnp.float32)
    msff2 = jax.random.normal(ks[4], (N, C, H2, W2), jnp.float32)
    msff3 = jax.random.normal(ks[5], (N, C, H3, W3), jnp.float32)

    # Conv weights: shape (1, 2, 7, 7), no bias (kaiming-uniform-ish bound).
    bound = float(1.0 / np.sqrt(2 * KSIZE * KSIZE))
    w1 = jax.random.uniform(ks[6], (1, 2, KSIZE, KSIZE), jnp.float32, -bound, bound)
    w2 = jax.random.uniform(ks[7], (1, 2, KSIZE, KSIZE), jnp.float32, -bound, bound)
    w3 = jax.random.uniform(ks[8], (1, 2, KSIZE, KSIZE), jnp.float32, -bound, bound)

    params = precompute_spatial_attention_params(
        (w1, w2, w3), ((H1, W1), (H2, W2), (H3, W3)))

    fwd = jax.jit(spatial_attention_module)
    out1, out2, out3 = fwd(msff1, msff2, msff3, (mi1, mi2, mi3), params)
    jax.block_until_ready((out1, out2, out3))

    # Attention maps are effectively bf16-precision (MXU default precision, bf16
    # K/U storage, approx reciprocal) -> 3e-2 tolerance vs. the f32 reference.
    r1, r2, r3 = _module_ref(msff1, msff2, msff3, (mi1, mi2, mi3), (w1, w2, w3))
    np.testing.assert_allclose(np.asarray(out1), np.asarray(r1), atol=3e-2, rtol=3e-2)
    np.testing.assert_allclose(np.asarray(out2), np.asarray(r2), atol=3e-2, rtol=3e-2)
    np.testing.assert_allclose(np.asarray(out3), np.asarray(r3), atol=3e-2, rtol=3e-2)

    print("KERNEL_OK")
</pallas_src>

<mosaic_0001>
module attributes {stable_mosaic.version = 11 : i64} {
  func.func @_fused_kernel(%arg0: i32, %arg1: memref<2x4x256xf32, #tpu.memory_space<vmem>>, %arg2: memref<2x4x64xf32, #tpu.memory_space<vmem>>, %arg3: memref<2x4x16xf32, #tpu.memory_space<vmem>>, %arg4: memref<2x4x256xf32, #tpu.memory_space<vmem>>, %arg5: memref<2x4x64xf32, #tpu.memory_space<vmem>>, %arg6: memref<2x4x16xf32, #tpu.memory_space<vmem>>, %arg7: memref<512x256xbf16, #tpu.memory_space<vmem>>, %arg8: memref<128x64xbf16, #tpu.memory_space<vmem>>, %arg9: memref<32x16xbf16, #tpu.memory_space<vmem>>, %arg10: memref<16x64xbf16, #tpu.memory_space<vmem>>, %arg11: memref<64x256xbf16, #tpu.memory_space<vmem>>, %arg12: memref<2x4x256xf32, #tpu.memory_space<vmem>>, %arg13: memref<2x4x64xf32, #tpu.memory_space<vmem>>, %arg14: memref<2x4x16xf32, #tpu.memory_space<vmem>>, %arg15: memref<2x512xf32, #tpu.memory_space<vmem>>) attributes {dimension_semantics = [#tpu.dimension_semantics<parallel>], iteration_bounds = array<i64: 1>, scalar_prefetch = 0 : i64, scratch_operands = 1 : i64, tpu.core_type = #tpu.core_type<tc>, window_params = [{transform_indices = @transform_0, window_bounds = array<i64: 2, 4, 256>}, {transform_indices = @transform_1, window_bounds = array<i64: 2, 4, 64>}, {transform_indices = @transform_2, window_bounds = array<i64: 2, 4, 16>}, {transform_indices = @transform_3, window_bounds = array<i64: 2, 4, 256>}, {transform_indices = @transform_4, window_bounds = array<i64: 2, 4, 64>}, {transform_indices = @transform_5, window_bounds = array<i64: 2, 4, 16>}, {pipeline_mode = #tpu.pipeline_mode<synchronous>, transform_indices = @transform_6, window_bounds = array<i64: 512, 256>}, {pipeline_mode = #tpu.pipeline_mode<synchronous>, transform_indices = @transform_7, window_bounds = array<i64: 128, 64>}, {pipeline_mode = #tpu.pipeline_mode<synchronous>, transform_indices = @transform_8, window_bounds = array<i64: 32, 16>}, {pipeline_mode = #tpu.pipeline_mode<synchronous>, transform_indices = @transform_9, window_bounds = array<i64: 16, 64>}, {pipeline_mode = #tpu.pipeline_mode<synchronous>, transform_indices = @transform_10, window_bounds = array<i64: 64, 256>}, {transform_indices = @transform_11, window_bounds = array<i64: 2, 4, 256>}, {transform_indices = @transform_12, window_bounds = array<i64: 2, 4, 64>}, {transform_indices = @transform_13, window_bounds = array<i64: 2, 4, 16>}]} {
    %c0 = arith.constant 0 : index
    %c0_0 = arith.constant 0 : index
    %c0_1 = arith.constant 0 : index
    %0 = vector.load %arg3[%c0, %c0_0, %c0_1] : memref<2x4x16xf32, #tpu.memory_space<vmem>>, vector<2x4x16xf32>
    %cst = arith.constant dense<0.000000e+00> : vector<2x16xf32>
    %1 = vector.multi_reduction <add>, %0, %cst [1] : vector<2x4x16xf32> to vector<2x16xf32>
    %cst_2 = arith.constant 4.000000e+00 : f32
    %2 = vector.broadcast %cst_2 : f32 to vector<2x16xf32>
    %3 = arith.divf %1, %2 : vector<2x16xf32>
    %cst_3 = arith.constant dense<0xFF800000> : vector<2x16xf32>
    %4 = vector.multi_reduction <maximumf>, %0, %cst_3 [1] : vector<2x4x16xf32> to vector<2x16xf32>
    %c0_4 = arith.constant 0 : index
    %c0_5 = arith.constant 0 : index
    %5 = vector.load %arg15[%c0_4, %c0_5] : memref<2x512xf32, #tpu.memory_space<vmem>>, vector<2x16xf32>
    tpu.vector_store %arg15[%c0_4, %c0_5], %3 {strides = array<i32>} : memref<2x512xf32, #tpu.memory_space<vmem>>, vector<2x16xf32>,
    %c0_6 = arith.constant 0 : index
    %c16 = arith.constant 16 : index
    %6 = vector.load %arg15[%c0_6, %c16] : memref<2x512xf32, #tpu.memory_space<vmem>>, vector<2x16xf32>
    tpu.vector_store %arg15[%c0_6, %c16], %4 {strides = array<i32>} : memref<2x512xf32, #tpu.memory_space<vmem>>, vector<2x16xf32>,
    %c0_7 = arith.constant 0 : index
    %c0_8 = arith.constant 0 : index
    %7 = vector.load %arg15[%c0_7, %c0_8] : memref<2x512xf32, #tpu.memory_space<vmem>>, vector<2x32xf32>
    %8 = arith.truncf %7 : vector<2x32xf32> to vector<2x32xbf16>
    %c0_9 = arith.constant 0 : index
    %c0_10 = arith.constant 0 : index
    %9 = vector.load %arg9[%c0_9, %c0_10] : memref<32x16xbf16, #tpu.memory_space<vmem>>, vector<32x16xbf16>
    %cst_11 = arith.constant dense<0.000000e+00> : vector<2x16xf32>
    %10 = tpu.matmul %8, %9, %cst_11 {dimension_numbers = #tpu.dot_dimension_numbers<[1], [0], [0], [1], [0, 0, 1, 1], [], []>} : vector<2x32xbf16>, vector<32x16xbf16>, vector<2x16xf32> -> vector<2x16xf32>
    %cst_12 = arith.constant 0.000000e+00 : f32
    %11 = vector.broadcast %cst_12 : f32 to vector<2x16xf32>
    %12 = arith.subf %11, %10 : vector<2x16xf32>
    %13 = math.exp %12 : vector<2x16xf32>
    %cst_13 = arith.constant 1.000000e+00 : f32
    %14 = vector.broadcast %cst_13 : f32 to vector<2x16xf32>
    %15 = arith.addf %14, %13 : vector<2x16xf32>
    %16 = tpu.reciprocal %15 {approx = true} : vector<2x16xf32> -> vector<2x16xf32>
    %c0_14 = arith.constant 0 : index
    %c0_15 = arith.constant 0 : index
    %c0_16 = arith.constant 0 : index
    %17 = vector.load %arg6[%c0_14, %c0_15, %c0_16] : memref<2x4x16xf32, #tpu.memory_space<vmem>>, vector<2x4x16xf32>
    %18 = vector.shape_cast %16 : vector<2x16xf32> to vector<2x1x16xf32>
    %19 = vector.broadcast %18 : vector<2x1x16xf32> to vector<2x4x16xf32>
    %20 = arith.mulf %17, %19 : vector<2x4x16xf32>
    %c0_17 = arith.constant 0 : index
    %c0_18 = arith.constant 0 : index
    %c0_19 = arith.constant 0 : index
    %21 = vector.load %arg14[%c0_17, %c0_18, %c0_19] : memref<2x4x16xf32, #tpu.memory_space<vmem>>, vector<2x4x16xf32>
    tpu.vector_store %arg14[%c0_17, %c0_18, %c0_19], %20 {strides = array<i32>} : memref<2x4x16xf32, #tpu.memory_space<vmem>>, vector<2x4x16xf32>,
    %22 = arith.truncf %16 : vector<2x16xf32> to vector<2x16xbf16>
    %c0_20 = arith.constant 0 : index
    %c0_21 = arith.constant 0 : index
    %23 = vector.load %arg10[%c0_20, %c0_21] : memref<16x64xbf16, #tpu.memory_space<vmem>>, vector<16x64xbf16>
    %cst_22 = arith.constant dense<0.000000e+00> : vector<2x64xf32>
    %24 = tpu.matmul %22, %23, %cst_22 {dimension_numbers = #tpu.dot_dimension_numbers<[1], [0], [0], [1], [0, 0, 1, 1], [], []>} : vector<2x16xbf16>, vector<16x64xbf16>, vector<2x64xf32> -> vector<2x64xf32>
    %c0_23 = arith.constant 0 : index
    %c0_24 = arith.constant 0 : index
    %c0_25 = arith.constant 0 : index
    %25 = vector.load %arg2[%c0_23, %c0_24, %c0_25] : memref<2x4x64xf32, #tpu.memory_space<vmem>>, vector<2x4x64xf32>
    %cst_26 = arith.constant dense<0.000000e+00> : vector<2x64xf32>
    %26 = vector.multi_reduction <add>, %25, %cst_26 [1] : vector<2x4x64xf32> to vector<2x64xf32>
    %cst_27 = arith.constant 4.000000e+00 : f32
    %27 = vector.broadcast %cst_27 : f32 to vector<2x64xf32>
    %28 = arith.divf %26, %27 : vector<2x64xf32>
    %cst_28 = arith.constant dense<0xFF800000> : vector<2x64xf32>
    %29 = vector.multi_reduction <maximumf>, %25, %cst_28 [1] : vector<2x4x64xf32> to vector<2x64xf32>
    %c0_29 = arith.constant 0 : index
    %c0_30 = arith.constant 0 : index
    %30 = vector.load %arg15[%c0_29, %c0_30] : memref<2x512xf32, #tpu.memory_space<vmem>>, vector<2x64xf32>
    tpu.vector_store %arg15[%c0_29, %c0_30], %28 {strides = array<i32>} : memref<2x512xf32, #tpu.memory_space<vmem>>, vector<2x64xf32>,
    %c0_31 = arith.constant 0 : index
    %c64 = arith.constant 64 : index
    %31 = vector.load %arg15[%c0_31, %c64] : memref<2x512xf32, #tpu.memory_space<vmem>>, vector<2x64xf32>
    tpu.vector_store %arg15[%c0_31, %c64], %29 {strides = array<i32>} : memref<2x512xf32, #tpu.memory_space<vmem>>, vector<2x64xf32>,
    %c0_32 = arith.constant 0 : index
    %c0_33 = arith.constant 0 : index
    %32 = vector.load %arg15[%c0_32, %c0_33] : memref<2x512xf32, #tpu.memory_space<vmem>>, vector<2x128xf32>
    %33 = arith.truncf %32 : vector<2x128xf32> to vector<2x128xbf16>
    %c0_34 = arith.constant 0 : index
    %c0_35 = arith.constant 0 : index
    %34 = vector.load %arg8[%c0_34, %c0_35] : memref<128x64xbf16, #tpu.memory_space<vmem>>, vector<128x64xbf16>
    %cst_36 = arith.constant dense<0.000000e+00> : vector<2x64xf32>
    %35 = tpu.matmul %33, %34, %cst_36 {dimension_numbers = #tpu.dot_dimension_numbers<[1], [0], [0], [1], [0, 0, 1, 1], [], []>} : vector<2x128xbf16>, vector<128x64xbf16>, vector<2x64xf32> -> vector<2x64xf32>
    %cst_37 = arith.constant 0.000000e+00 : f32
    %36 = vector.broadcast %cst_37 : f32 to vector<2x64xf32>
    %37 = arith.subf %36, %35 : vector<2x64xf32>
    %38 = math.exp %37 : vector<2x64xf32>
    %cst_38 = arith.constant 1.000000e+00 : f32
    %39 = vector.broadcast %cst_38 : f32 to vector<2x64xf32>
    %40 = arith.addf %39, %38 : vector<2x64xf32>
    %41 = tpu.reciprocal %40 {approx = true} : vector<2x64xf32> -> vector<2x64xf32>
    %42 = arith.mulf %24, %41 : vector<2x64xf32>
    %c0_39 = arith.constant 0 : index
    %c0_40 = arith.constant 0 : index
    %c0_41 = arith.constant 0 : index
    %43 = vector.load %arg5[%c0_39, %c0_40, %c0_41] : memref<2x4x64xf32, #tpu.memory_space<vmem>>, vector<2x4x64xf32>
    %44 = vector.shape_cast %42 : vector<2x64xf32> to vector<2x1x64xf32>
    %45 = vector.broadcast %44 : vector<2x1x64xf32> to vector<2x4x64xf32>
    %46 = arith.mulf %43, %45 : vector<2x4x64xf32>
    %c0_42 = arith.constant 0 : index
    %c0_43 = arith.constant 0 : index
    %c0_44 = arith.constant 0 : index
    %47 = vector.load %arg13[%c0_42, %c0_43, %c0_44] : memref<2x4x64xf32, #tpu.memory_space<vmem>>, vector<2x4x64xf32>
    tpu.vector_store %arg13[%c0_42, %c0_43, %c0_44], %46 {strides = array<i32>} : memref<2x4x64xf32, #tpu.memory_space<vmem>>, vector<2x4x64xf32>,
    %48 = arith.truncf %42 : vector<2x64xf32> to vector<2x64xbf16>
    %c0_45 = arith.constant 0 : index
    %c0_46 = arith.constant 0 : index
    %49 = vector.load %arg11[%c0_45, %c0_46] : memref<64x256xbf16, #tpu.memory_space<vmem>>, vector<64x256xbf16>
    %cst_47 = arith.constant dense<0.000000e+00> : vector<2x256xf32>
    %50 = tpu.matmul %48, %49, %cst_47 {dimension_numbers = #tpu.dot_dimension_numbers<[1], [0], [0], [1], [0, 0, 1, 1], [], []>} : vector<2x64xbf16>, vector<64x256xbf16>, vector<2x256xf32> -> vector<2x256xf32>
    %c0_48 = arith.constant 0 : index
    %c0_49 = arith.constant 0 : index
    %c0_50 = arith.constant 0 : index
    %51 = vector.load %arg1[%c0_48, %c0_49, %c0_50] : memref<2x4x256xf32, #tpu.memory_space<vmem>>, vector<2x4x256xf32>
    %cst_51 = arith.constant dense<0.000000e+00> : vector<2x256xf32>
    %52 = vector.multi_reduction <add>, %51, %cst_51 [1] : vector<2x4x256xf32> to vector<2x256xf32>
    %cst_52 = arith.constant 4.000000e+00 : f32
    %53 = vector.broadcast %cst_52 : f32 to vector<2x256xf32>
    %54 = arith.divf %52, %53 : vector<2x256xf32>
    %cst_53 = arith.constant dense<0xFF800000> : vector<2x256xf32>
    %55 = vector.multi_reduction <maximumf>, %51, %cst_53 [1] : vector<2x4x256xf32> to vector<2x256xf32>
    %c0_54 = arith.constant 0 : index
    %c0_55 = arith.constant 0 : index
    %56 = vector.load %arg15[%c0_54, %c0_55] : memref<2x512xf32, #tpu.memory_space<vmem>>, vector<2x256xf32>
    tpu.vector_store %arg15[%c0_54, %c0_55], %54 {strides = array<i32>} : memref<2x512xf32, #tpu.memory_space<vmem>>, vector<2x256xf32>,
    %c0_56 = arith.constant 0 : index
    %c256 = arith.constant 256 : index
    %57 = vector.load %arg15[%c0_56, %c256] : memref<2x512xf32, #tpu.memory_space<vmem>>, vector<2x256xf32>
    tpu.vector_store %arg15[%c0_56, %c256], %55 {strides = array<i32>} : memref<2x512xf32, #tpu.memory_space<vmem>>, vector<2x256xf32>,
    %c0_57 = arith.constant 0 : index
    %c0_58 = arith.constant 0 : index
    %58 = vector.load %arg15[%c0_57, %c0_58] : memref<2x512xf32, #tpu.memory_space<vmem>>, vector<2x512xf32>
    %59 = arith.truncf %58 : vector<2x512xf32> to vector<2x512xbf16>
    %c0_59 = arith.constant 0 : index
    %c0_60 = arith.constant 0 : index
    %60 = vector.load %arg7[%c0_59, %c0_60] : memref<512x256xbf16, #tpu.memory_space<vmem>>, vector<512x256xbf16>
    %cst_61 = arith.constant dense<0.000000e+00> : vector<2x256xf32>
    %61 = tpu.matmul %59, %60, %cst_61 {dimension_numbers = #tpu.dot_dimension_numbers<[1], [0], [0], [1], [0, 0, 1, 1], [], []>} : vector<2x512xbf16>, vector<512x256xbf16>, vector<2x256xf32> -> vector<2x256xf32>
    %cst_62 = arith.constant 0.000000e+00 : f32
    %62 = vector.broadcast %cst_62 : f32 to vector<2x256xf32>
    %63 = arith.subf %62, %61 : vector<2x256xf32>
    %64 = math.exp %63 : vector<2x256xf32>
    %cst_63 = arith.constant 1.000000e+00 : f32
    %65 = vector.broadcast %cst_63 : f32 to vector<2x256xf32>
    %66 = arith.addf %65, %64 : vector<2x256xf32>
    %67 = tpu.reciprocal %66 {approx = true} : vector<2x256xf32> -> vector<2x256xf32>
    %68 = arith.mulf %50, %67 : vector<2x256xf32>
    %c0_64 = arith.constant 0 : index
    %c0_65 = arith.constant 0 : index
    %c0_66 = arith.constant 0 : index
    %69 = vector.load %arg4[%c0_64, %c0_65, %c0_66] : memref<2x4x256xf32, #tpu.memory_space<vmem>>, vector<2x4x256xf32>
    %70 = vector.shape_cast %68 : vector<2x256xf32> to vector<2x1x256xf32>
    %71 = vector.broadcast %70 : vector<2x1x256xf32> to vector<2x4x256xf32>
    %72 = arith.mulf %69, %71 : vector<2x4x256xf32>
    %c0_67 = arith.constant 0 : index
    %c0_68 = arith.constant 0 : index
    %c0_69 = arith.constant 0 : index
    %73 = vector.load %arg12[%c0_67, %c0_68, %c0_69] : memref<2x4x256xf32, #tpu.memory_space<vmem>>, vector<2x4x256xf32>
    tpu.vector_store %arg12[%c0_67, %c0_68, %c0_69], %72 {strides = array<i32>} : memref<2x4x256xf32, #tpu.memory_space<vmem>>, vector<2x4x256xf32>,
    return
  }
  func.func @transform_0(%arg0: i32) -> (i32, i32, i32) {
    %c0_i32 = arith.constant 0 : i32
    %c0_i32_0 = arith.constant 0 : i32
    %c0_i32_1 = arith.constant 0 : i32
    return %arg0, %c0_i32, %c0_i32_0 : i32, i32, i32
  }
  func.func @transform_1(%arg0: i32) -> (i32, i32, i32) {
    %c0_i32 = arith.constant 0 : i32
    %c0_i32_0 = arith.constant 0 : i32
    %c0_i32_1 = arith.constant 0 : i32
    return %arg0, %c0_i32, %c0_i32_0 : i32, i32, i32
  }
  func.func @transform_2(%arg0: i32) -> (i32, i32, i32) {
    %c0_i32 = arith.constant 0 : i32
    %c0_i32_0 = arith.constant 0 : i32
    %c0_i32_1 = arith.constant 0 : i32
    return %arg0, %c0_i32, %c0_i32_0 : i32, i32, i32
  }
  func.func @transform_3(%arg0: i32) -> (i32, i32, i32) {
    %c0_i32 = arith.constant 0 : i32
    %c0_i32_0 = arith.constant 0 : i32
    %c0_i32_1 = arith.constant 0 : i32
    return %arg0, %c0_i32, %c0_i32_0 : i32, i32, i32
  }
  func.func @transform_4(%arg0: i32) -> (i32, i32, i32) {
    %c0_i32 = arith.constant 0 : i32
    %c0_i32_0 = arith.constant 0 : i32
    %c0_i32_1 = arith.constant 0 : i32
    return %arg0, %c0_i32, %c0_i32_0 : i32, i32, i32
  }
  func.func @transform_5(%arg0: i32) -> (i32, i32, i32) {
    %c0_i32 = arith.constant 0 : i32
    %c0_i32_0 = arith.constant 0 : i32
    %c0_i32_1 = arith.constant 0 : i32
    return %arg0, %c0_i32, %c0_i32_0 : i32, i32, i32
  }
  func.func @transform_6(%arg0: i32) -> (i32, i32) {
    %c0_i32 = arith.constant 0 : i32
    %c0_i32_0 = arith.constant 0 : i32
    %c0_i32_1 = arith.constant 0 : i32
    return %c0_i32, %c0_i32_0 : i32, i32
  }
  func.func @transform_7(%arg0: i32) -> (i32, i32) {
    %c0_i32 = arith.constant 0 : i32
    %c0_i32_0 = arith.constant 0 : i32
    %c0_i32_1 = arith.constant 0 : i32
    return %c0_i32, %c0_i32_0 : i32, i32
  }
  func.func @transform_8(%arg0: i32) -> (i32, i32) {
    %c0_i32 = arith.constant 0 : i32
    %c0_i32_0 = arith.constant 0 : i32
    %c0_i32_1 = arith.constant 0 : i32
    return %c0_i32, %c0_i32_0 : i32, i32
  }
  func.func @transform_9(%arg0: i32) -> (i32, i32) {
    %c0_i32 = arith.constant 0 : i32
    %c0_i32_0 = arith.constant 0 : i32
    %c0_i32_1 = arith.constant 0 : i32
    return %c0_i32, %c0_i32_0 : i32, i32
  }
  func.func @transform_10(%arg0: i32) -> (i32, i32) {
    %c0_i32 = arith.constant 0 : i32
    %c0_i32_0 = arith.constant 0 : i32
    %c0_i32_1 = arith.constant 0 : i32
    return %c0_i32, %c0_i32_0 : i32, i32
  }
  func.func @transform_11(%arg0: i32) -> (i32, i32, i32) {
    %c0_i32 = arith.constant 0 : i32
    %c0_i32_0 = arith.constant 0 : i32
    %c0_i32_1 = arith.constant 0 : i32
    return %arg0, %c0_i32, %c0_i32_0 : i32, i32, i32
  }
  func.func @transform_12(%arg0: i32) -> (i32, i32, i32) {
    %c0_i32 = arith.constant 0 : i32
    %c0_i32_0 = arith.constant 0 : i32
    %c0_i32_1 = arith.constant 0 : i32
    return %arg0, %c0_i32, %c0_i32_0 : i32, i32, i32
  }
  func.func @transform_13(%arg0: i32) -> (i32, i32, i32) {
    %c0_i32 = arith.constant 0 : i32
    %c0_i32_0 = arith.constant 0 : i32
    %c0_i32_1 = arith.constant 0 : i32
    return %arg0, %c0_i32, %c0_i32_0 : i32, i32, i32
  }
}

</mosaic_0001>

<bundles_post_ra>
// kernel: spatial_attention_module.1
= control target key start
LH: loop header
LB: loop body
LE: loop exit
PB: predicated region body
PF: predicated region fallthrough
CT: control target
= control target key end

     0   :  { %vm44_vm0 = vcmask 125952   ;;  %vm89_vm1 = vcmask 1041409   ;;  %vm91_vm2 = vcmask 1043459   ;;  %vm93_vm3 = vcmask 1045509   ;;  %s2217_s2 = inlined_call_operand.vmem [shape: f32[2,4,16], index: 2, kind: input, shape index: {}]   ;;  %s2218_s0 = inlined_call_operand.vmem [shape: f32[2,4,256], index: 0, kind: input, shape index: {}]   ;;  %s2219_s1 = inlined_call_operand.vmem [shape: f32[2,4,64], index: 1, kind: input, shape index: {}]   ;;  %s2220_s8 = inlined_call_operand.vmem [shape: bf16[32,16], index: 8, kind: input, shape index: {}]   ;;  %s2221_s7 = inlined_call_operand.vmem [shape: bf16[128,64], index: 7, kind: input, shape index: {}]   ;;  %s2222_s9 = inlined_call_operand.vmem [shape: bf16[16,64], index: 9, kind: input, shape index: {}]   ;;  %s2223_s10 = inlined_call_operand.vmem [shape: bf16[64,256], index: 10, kind: input, shape index: {}]   ;;  %s2224_s5 = inlined_call_operand.vmem [shape: f32[2,4,16], index: 5, kind: input, shape index: {}]   ;;  %s2225_s13 = inlined_call_operand.vmem [shape: f32[2,4,16], index: 13, kind: output, shape index: {2}]   ;;  %s2226_s6 = inlined_call_operand.vmem [shape: bf16[512,256], index: 6, kind: input, shape index: {}]   ;;  %s2227_s4 = inlined_call_operand.vmem [shape: f32[2,4,64], index: 4, kind: input, shape index: {}]   ;;  %s2228_s12 = inlined_call_operand.vmem [shape: f32[2,4,64], index: 12, kind: output, shape index: {1}]   ;;  %s2229_s3 = inlined_call_operand.vmem [shape: f32[2,4,256], index: 3, kind: input, shape index: {}]   ;;  %s2230_s11 = inlined_call_operand.vmem [shape: f32[2,4,256], index: 11, kind: output, shape index: {0}]  }
   0x1   :  { %v1615_v0 = vld [vmem:[%s2217_s2] sm:$0xf]  ;;  %v1620_v1 = vld [vmem:[%s2217_s2 + $0x4] sm:$0xf]  ;;  %v428_v5 = vld [vmem:[%s2218_s0 + $0x8] sm:$0xff]  ;;  %vm95_vm4 = vcmask 1047559  }
   0x2   :  { %v68_v2 = vsel %vm44_vm0, %v1615_v0, -inf  ;;  %v75_v3 = vsel %vm44_vm0, %v1620_v1, -inf  ;;  %v427_v4 = vld [vmem:[%s2218_s0] sm:$0xff]  ;;  %435 = vst [vmem:[#allocation1 + $0x10] ss:$2 sm:$0xff] %v428_v5  ;;  %vm442_vm5 = vcmask 1043456  }
   0x3   :  { %v69_v6 = vrot.slane %v68_v2, 4  ;;  %v76_v7 = vrot.slane %v75_v3, 4  ;;  %431 = vst [vmem:[#allocation1] ss:$2 sm:$0xff] %v427_v4  ;;  %s1539_s0 = smov 16   ;;  %vm520_vm6 = vcmask 1041408  }
   0x4   :  { %vm194_vm7 = vcmask 519168   ;;  %vm98_vm9 = vcmask 123904   ;;  %vm112_vm10 = vcmask 255104   ;;  %vm235_vm11 = vcmask 517120  }
   0x5   :  { %v70_v8 = vmax.f32 %v68_v2, %v69_v6  ;;  %v77_v9 = vmax.f32 %v75_v3, %v76_v7  ;;  %v1540_v6 = vmov 4.0   ;;  %v52_v7 = vsel %vm44_vm0, %v1620_v1, 0.0 }
   0x6   :  { %1521 = vrcp.f32 %v1540_v6  ;;  %v1444_v6 = vld [vmem:[%s2221_s7 + $0x30] sm:$0xff]  ;;  %vm132_vm12 = vcmask 261120   ;;  %vm249_vm13 = vcmask 1041920   ;;  %vm175_vm14 = vcmask 130048  }
   0x7   :  { %v71_v10 = vrot.slane %v70_v8, 2  ;;  %v78_v11 = vrot.slane %v77_v9, 2  ;;  %vm397_vm15 = vcmask 523264  }
   0x9   :  { %v72_v12 = vmax.f32 %v70_v8, %v71_v10  ;;  %v79_v13 = vmax.f32 %v77_v9, %v78_v11  ;;  %v1636_v18 = vld.sshfl [vmem:[#allocation1 + $0x10] sm:$0xff pattern:$0x75316420]  ;;  %v1638_v19 = vld.sshfl [vmem:[#allocation1 + $0x18] sm:$0xff pattern:$0x75316420] }
   0xa   :  { %v1632_v14 = vld.sshfl [vmem:[#allocation1] sm:$0xff pattern:$0x75316420]  ;;  %v1634_v15 = vld.sshfl [vmem:[#allocation1 + $0x8] sm:$0xff pattern:$0x75316420] }
   0xb   :  { %v73_v16 = vrot.slane %v72_v12, 1  ;;  %v80_v17 = vrot.slane %v79_v13, 1  ;;  %475 = vst [vmem:[#allocation1] ss:$2 sm:$0xff] %v427_v4  ;;  %v53_v8 = vrot.slane %v52_v7, 4 }
   0xc   :  { %479 = vst [vmem:[#allocation1 + $0x10] ss:$2 sm:$0xff] %v428_v5  ;;  %v1522_v9 = vpop.eup %1521 }
   0xd   :  { %v74_v20 = vmax.f32 %v72_v12, %v73_v16  ;;  %v81_v21 = vmax.f32 %v79_v13, %v80_v17  ;;  %v54_v10 = vadd.f32 %v53_v8, %v52_v7  ;;  %v60_v11 = vmul.f32 4.0, %v1522_v9 }
   0xe   :  { %v45_v13 = vsel %vm44_vm0, %v1615_v0, 0.0  ;;  %vm64_vm8 = vweird.f32 %v1522_v9 }
   0xf   :  { %v104_v22 = vrot.slane %v81_v21, 7  ;;  %v55_v12 = vrot.slane %v54_v10, 2  ;;  %v61_v16 = vsub.f32 1.0, %v60_v11  ;;  %v46_v17 = vrot.slane %v45_v13, 4  ;;  %v1443_v11 = vld [vmem:[%s2221_s7 + $0x28] sm:$0xff] }
  0x11   :  { %v105_v23 = vsel %vm89_vm1, %v104_v22, %v74_v20  ;;  %v56_v20 = vadd.f32 %v55_v12, %v54_v10  ;;  %v62_v21 = vmul.f32 %v1522_v9, %v61_v16 }
  0x12   :  { %v106_v24 = vsel %vm91_vm2, %v104_v22, %v105_v23  ;;  %v476_v26 = vld.sshfl [vmem:[#allocation1] sm:$0xff pattern:$0x75316420]  ;;  %v477_v27 = vld.sshfl [vmem:[#allocation1 + $0x8] sm:$0xff pattern:$0x75316420] }
  0x13   :  { %v107_v25 = vsel %vm93_vm3, %v104_v22, %v106_v24  ;;  %v480_v29 = vld.sshfl [vmem:[#allocation1 + $0x10] sm:$0xff pattern:$0x75316420]  ;;  %v481_v30 = vld.sshfl [vmem:[#allocation1 + $0x18] sm:$0xff pattern:$0x75316420]  ;;  %v63_v1 = vadd.f32 %v1522_v9, %v62_v21 }
  0x14   :  { %v108_v28 = vsel %vm95_vm4, %v104_v22, %v107_v25  ;;  %v486_v31 = vsel %vm442_vm5, %v476_v26, -inf  ;;  %v493_v32 = vsel %vm442_vm5, %v477_v27, -inf  ;;  %v500_v33 = vsel %vm442_vm5, %v480_v29, -inf  ;;  %v193_v24 = vld [vmem:[%s2219_s1 + $0x4] sm:$0xf] }
  0x15   :  { %109 = vrot.lane.b32.xlu0 %v108_v28, %s1539_s0  ;;  %v507_v34 = vsel %vm442_vm5, %v481_v30, -inf  ;;  %v487_v35 = vrot.slane %v486_v31, 4  ;;  %v494_v36 = vrot.slane %v493_v32, 4  ;;  %v501_v37 = vrot.slane %v500_v33, 4  ;;  %v192_v26 = vld [vmem:[%s2219_s1] sm:$0xf] }
  0x16   :  { %v508_v38 = vrot.slane %v507_v34, 4  ;;  %v47_v22 = vadd.f32 %v46_v17, %v45_v13  ;;  %v57_v23 = vrot.slane %v56_v20, 1  ;;  %v218_v25 = vsel %vm194_vm7, %v193_v24, -inf  ;;  %s1541_s1 = smov 64   ;;  %v1442_v17 = vld [vmem:[%s2221_s7 + $0x20] sm:$0xff] }
  0x17   :  { %v488_v39 = vmax.f32 %v486_v31, %v487_v35  ;;  %v495_v40 = vmax.f32 %v493_v32, %v494_v36  ;;  %v502_v41 = vmax.f32 %v500_v33, %v501_v37  ;;  %v219_v0 = vrot.slane %v218_v25, 4 }
  0x18   :  { %v509_v42 = vmax.f32 %v507_v34, %v508_v38  ;;  %v211_v27 = vsel %vm194_vm7, %v192_v26, -inf  ;;  %v48_v28 = vrot.slane %v47_v22, 2  ;;  %v58_v29 = vadd.f32 %v57_v23, %v56_v20 }
  0x19   :  { %v489_v43 = vrot.slane %v488_v39, 2  ;;  %v496_v44 = vrot.slane %v495_v40, 2  ;;  %v503_v45 = vrot.slane %v502_v41, 2  ;;  %v212_v30 = vrot.slane %v211_v27, 4 }
  0x1a   :  { %v510_v46 = vrot.slane %v509_v42, 2  ;;  %v220_v31 = vmax.f32 %v218_v25, %v219_v0  ;;  %v1666_v32 = vsel %vm64_vm8, %v1522_v9, %v63_v1  ;;  %v49_v36 = vadd.f32 %v48_v28, %v47_v22  ;;  %v1441_v22 = vld [vmem:[%s2221_s7 + $0x18] sm:$0xff] }
  0x1b   :  { %v490_v47 = vmax.f32 %v488_v39, %v489_v43  ;;  %v497_v48 = vmax.f32 %v495_v40, %v496_v44  ;;  %v504_v49 = vmax.f32 %v502_v41, %v503_v45  ;;  %v213_v33 = vmax.f32 %v211_v27, %v212_v30  ;;  %v1438_v30 = vld [vmem:[%s2221_s7] sm:$0xff] }
  0x1c   :  { %v511_v50 = vmax.f32 %v509_v42, %v510_v46  ;;  %v221_v34 = vrot.slane %v220_v31, 2  ;;  %v67_v35 = vmul.f32 %v1666_v32, %v58_v29  ;;  %v50_v39 = vrot.slane %v49_v36, 1  ;;  %v1439_v29 = vld [vmem:[%s2221_s7 + $0x8] sm:$0xff] }
  0x1d   :  { %v491_v51 = vrot.slane %v490_v47, 1  ;;  %v498_v52 = vrot.slane %v497_v48, 1  ;;  %v505_v53 = vrot.slane %v504_v49, 1  ;;  %v214_v37 = vrot.slane %v213_v33, 2 }
  0x1e   :  { %v512_v54 = vrot.slane %v511_v50, 1  ;;  %v222_v38 = vmax.f32 %v220_v31, %v221_v34  ;;  %v88_v42 = vrot.slane %v67_v35, 7  ;;  %v51_v43 = vadd.f32 %v50_v39, %v49_v36 }
  0x1f   :  { %v492_v55 = vmax.f32 %v490_v47, %v491_v51  ;;  %v499_v56 = vmax.f32 %v497_v48, %v498_v52  ;;  %v506_v57 = vmax.f32 %v504_v49, %v505_v53  ;;  %v215_v40 = vmax.f32 %v213_v33, %v214_v37 }
  0x20   :  { %v513_v58 = vmax.f32 %v511_v50, %v512_v54  ;;  %v223_v41 = vrot.slane %v222_v38, 1  ;;  %v66_v46 = vmul.f32 %v1666_v32, %v51_v43  ;;  %v443_v31 = vsel %vm442_vm5, %v1632_v14, 0.0 }
  0x21   :  { %v536_v59 = vrot.slane %v499_v56, 6  ;;  %v216_v44 = vrot.slane %v215_v40, 1  ;;  %v450_v33 = vsel %vm442_vm5, %v1634_v15, 0.0  ;;  %v457_v34 = vsel %vm442_vm5, %v1636_v18, 0.0 }
  0x22   :  { %v537_v60 = vrot.slane %v513_v58, 6  ;;  %v224_v45 = vmax.f32 %v222_v38, %v223_v41  ;;  %v90_v49 = vsel %vm89_vm1, %v88_v42, %v66_v46  ;;  %v1435_v58 = vld [vmem:[%s2220_s8] sm:$0xff]  ;;  %v464_v35 = vsel %vm442_vm5, %v1638_v19, 0.0 }
  0x23   :  { %v538_v61 = vsel %vm520_vm6, %v492_v55, %v536_v59  ;;  %v217_v47 = vmax.f32 %v215_v40, %v216_v44  ;;  %v92_v51 = vsel %vm91_vm2, %v88_v42, %v90_v49  ;;  %v195_v59 = vsel %vm194_vm7, %v192_v26, 0.0 }
  0x24   :  { %v539_v62 = vsel %vm520_vm6, %v506_v57, %v537_v60  ;;  %v241_v48 = vrot.slane %v224_v45, 7  ;;  %v94_v53 = vsel %vm93_vm3, %v88_v42, %v92_v51  ;;  %v1436_v57 = vld [vmem:[%s2220_s8 + $0x8] sm:$0xff]  ;;  %v202_v60 = vsel %vm194_vm7, %v193_v24, 0.0  ;;  %v1440_v24 = vld [vmem:[%s2221_s7 + $0x10] sm:$0xff] }
  0x25   :  { %v542_v63 = vrot.slane %v539_v62, 7  ;;  %v96_v55 = vsel %vm95_vm4, %v88_v42, %v94_v53  ;;  %142 = vmatpush.bf16.msra.mxu0 %v1436_v57  ;;  %v203_v62 = vrot.slane %v202_v60, 4  ;;  %v444_v36 = vrot.slane %v443_v31, 4 }
  0x26   :  { %v242_v50 = vsel %vm89_vm1, %v241_v48, %v217_v47  ;;  %99 = vst.msk [vmem:[#allocation2] sm:$0x3] %vm98_vm9, %v96_v55  ;;  %v451_v37 = vrot.slane %v450_v33, 4  ;;  %v458_v38 = vrot.slane %v457_v34, 4  ;;  %v465_v39 = vrot.slane %v464_v35, 4 }
  0x27   :  { %v543_v2 = vsel %vm89_vm1, %v542_v63, %v538_v61  ;;  %v243_v52 = vsel %vm91_vm2, %v241_v48, %v242_v50  ;;  %v196_v61 = vrot.slane %v195_v59, 4  ;;  %v445_v40 = vadd.f32 %v444_v36, %v443_v31 }
  0x28   :  { %v544_v3 = vsel %vm91_vm2, %v542_v63, %v543_v2  ;;  %v244_v54 = vsel %vm93_vm3, %v241_v48, %v243_v52  ;;  %v204_v2 = vadd.f32 %v203_v62, %v202_v60  ;;  %v452_v41 = vadd.f32 %v451_v37, %v450_v33  ;;  %v154_v33 = vld [vmem:[%s2224_s5] sm:$0xf]  ;;  %v155_v37 = vld [vmem:[%s2224_s5 + $0x4] sm:$0xf] }
  0x29   :  { %v545_v4 = vsel %vm93_vm3, %v542_v63, %v544_v3  ;;  %v245_v56 = vsel %vm95_vm4, %v241_v48, %v244_v54  ;;  %143 = vmatpush.bf16.msra.mxu0 %v1435_v58  ;;  %v1445_v3 = vld [vmem:[%s2221_s7 + $0x38] sm:$0xff]  ;;  %v459_v42 = vadd.f32 %v458_v38, %v457_v34  ;;  %v466_v43 = vadd.f32 %v465_v39, %v464_v35 }
  0x2a   :  { %v546_v5 = vsel %vm95_vm4, %v542_v63, %v545_v4  ;;  %246 = vrot.lane.b32.xlu0 %v245_v56, %s1541_s1  ;;  %v197_v63 = vadd.f32 %v196_v61, %v195_v59  ;;  %317 = vmatpush.bf16.msra.mxu2 %v1445_v3  ;;  %v446_v44 = vrot.slane %v445_v40, 2  ;;  %v453_v45 = vrot.slane %v452_v41, 2 }
  0x2b   :  { %548 = vst [vmem:[#allocation2 + $0x4] sm:$0xf] %v546_v5  ;;  %v205_v5 = vrot.slane %v204_v2, 2  ;;  %v460_v14 = vrot.slane %v459_v42, 2  ;;  %v467_v46 = vrot.slane %v466_v43, 2 }
  0x2c   :  { %v198_v4 = vrot.slane %v197_v63, 2  ;;  %v447_v47 = vadd.f32 %v446_v44, %v445_v40  ;;  %v454_v15 = vadd.f32 %v453_v45, %v452_v41  ;;  %v1155_v41 = vld [vmem:[%s2223_s10 + $0x10] sm:$0xf]  ;;  %v1157_v45 = vld [vmem:[%s2223_s10 + $0x18] sm:$0xf0] }
  0x2d   :  { %v206_v8 = vadd.f32 %v205_v5, %v204_v2  ;;  %v461_v48 = vadd.f32 %v460_v14, %v459_v42  ;;  %v468_v49 = vadd.f32 %v467_v46, %v466_v43  ;;  %v1449_v42 = vld [vmem:[%s2223_s10 + $0x14] sm:$0xf0]  ;;  %v1448_v43 = vld [vmem:[%s2223_s10 + $0x14] sm:$0xf]  ;;  %v1429_v14 = vld [vmem:[%s2226_s6 + $0x1f0] sm:$0xf] }
  0x2e   :  { %v199_v7 = vadd.f32 %v198_v4, %v197_v63  ;;  %318 = vmatpush.bf16.msra.mxu2 %v1444_v6  ;;  %v448_v18 = vrot.slane %v447_v47, 1  ;;  %v455_v50 = vrot.slane %v454_v15, 1  ;;  %v1156_v44 = vor.u32 %v1449_v42, %v1155_v41  ;;  %v1517_v46 = vld [vmem:[%s2226_s6 + $0x1f4] sm:$0xf0]  ;;  %v1269_v42 = vld [vmem:[%s2226_s6 + $0xb0] sm:$0xf] }
  0x2f   :  { %v207_v10 = vrot.slane %v206_v8, 1  ;;  %v462_v51 = vrot.slane %v461_v48, 1  ;;  %v469_v19 = vrot.slane %v468_v49, 1 }
  0x30   :  { %v200_v9 = vrot.slane %v199_v7, 1  ;;  %v449_v52 = vadd.f32 %v448_v18, %v447_v47  ;;  %v456_v53 = vadd.f32 %v455_v50, %v454_v15  ;;  %v1160_v47 = vor.u32 %v1448_v43, %v1157_v45  ;;  %v1147_v18 = vld [vmem:[%s2223_s10] sm:$0xf]  ;;  %v1477_v43 = vld [vmem:[%s2226_s6 + $0xb4] sm:$0xf0] }
  0x31   :  { %v208_v12 = vadd.f32 %v207_v10, %v206_v8  ;;  %v463_v54 = vadd.f32 %v462_v51, %v461_v48  ;;  %v470_v55 = vadd.f32 %v469_v19, %v468_v49  ;;  %v1437_v10 = vld [vmem:[%s2222_s9] sm:$0xff]  ;;  %v1430_v15 = vor.u32 %v1517_v46, %v1429_v14  ;;  %v1237_v48 = vld [vmem:[%s2226_s6 + $0x70] sm:$0xf]  ;;  %v1469_v49 = vld [vmem:[%s2226_s6 + $0x74] sm:$0xf0] }
  0x32   :  { %v201_v13 = vadd.f32 %v200_v9, %v199_v7  ;;  %319 = vmatpush.bf16.msra.mxu2 %v1443_v11  ;;  %v471_v56 = vmul.f32 %v449_v52, %v1666_v32  ;;  %v472_v57 = vmul.f32 %v456_v53, %v1666_v32  ;;  %186 = vmatpush.bf16.msra.mxu1 %v1437_v10  ;;  %v1171_v11 = vld [vmem:[%s2223_s10 + $0x30] sm:$0xf]  ;;  %v1447_v51 = vld [vmem:[%s2223_s10 + $0x4] sm:$0xf0]  ;;  %v1446_v19 = vld [vmem:[%s2223_s10 + $0x4] sm:$0xf] }
  0x33   :  { %v210_v16 = vmul.f32 %v208_v12, %v1666_v32  ;;  %v473_v58 = vmul.f32 %v463_v54, %v1666_v32  ;;  %v474_v59 = vmul.f32 %v470_v55, %v1666_v32  ;;  %v1453_v12 = vld [vmem:[%s2223_s10 + $0x34] sm:$0xf0]  ;;  %v1238_v50 = vor.u32 %v1469_v49, %v1237_v48  ;;  %v1149_v52 = vld [vmem:[%s2223_s10 + $0x8] sm:$0xf0]  ;;  %v1301_v55 = vld [vmem:[%s2226_s6 + $0xf0] sm:$0xf] }
  0x34   :  { %v209_v20 = vmul.f32 %v201_v13, %v1666_v32  ;;  %v518_v60 = vrot.slane %v472_v57, 6  ;;  %v1452_v13 = vld [vmem:[%s2223_s10 + $0x34] sm:$0xf]  ;;  %v1148_v53 = vor.u32 %v1447_v51, %v1147_v18  ;;  %v1152_v54 = vor.u32 %v1446_v19, %v1149_v52  ;;  %v1365_v57 = vld [vmem:[%s2226_s6 + $0x170] sm:$0xf] }
  0x35   :  { %v229_v21 = vrot.slane %v210_v16, 7  ;;  %v519_v61 = vrot.slane %v474_v59, 6  ;;  %v1172_v16 = vor.u32 %v1453_v12, %v1171_v11  ;;  %948 = vmatpush.bf16.msrb.mxu0 %v1238_v50  ;;  %v1501_v59 = vld [vmem:[%s2226_s6 + $0x174] sm:$0xf0]  ;;  %v1221_v11 = vld [vmem:[%s2226_s6 + $0x50] sm:$0xf]  ;;  %v1270_v18 = vor.u32 %v1477_v43, %v1269_v42 }
  0x36   :  { %320 = vmatpush.bf16.msra.mxu2 %v1442_v17  ;;  %v521_v62 = vsel %vm520_vm6, %v471_v56, %v518_v60  ;;  %v1173_v17 = vld [vmem:[%s2223_s10 + $0x38] sm:$0xf0]  ;;  %v1485_v56 = vld [vmem:[%s2226_s6 + $0xf4] sm:$0xf0]  ;;  %v1421_v60 = vld [vmem:[%s2226_s6 + $0x1e0] sm:$0xf] }
  0x37   :  { %v230_v23 = vsel %vm89_vm1, %v229_v21, %v209_v20  ;;  %v522_v63 = vsel %vm520_vm6, %v473_v58, %v519_v61  ;;  %v1163_v20 = vld [vmem:[%s2223_s10 + $0x20] sm:$0xf]  ;;  %405 = vmatpush.bf16.msra.mxu3 %v1172_v16  ;;  %v1302_v58 = vor.u32 %v1485_v56, %v1301_v55  ;;  %v1515_v61 = vld [vmem:[%s2226_s6 + $0x1e4] sm:$0xf0]  ;;  %v1513_v10 = vld [vmem:[%s2226_s6 + $0x1d4] sm:$0xf0] }
  0x38   :  { %v231_v25 = vsel %vm91_vm2, %v229_v21, %v230_v23  ;;  %v525_v2 = vrot.slane %v522_v63, 7  ;;  %v1450_v23 = vld [vmem:[%s2223_s10 + $0x24] sm:$0xf]  ;;  %v1422_v63 = vor.u32 %v1515_v61, %v1421_v60  ;;  %v1465_v16 = vld [vmem:[%s2226_s6 + $0x54] sm:$0xf0] }
  0x39   :  { %v232_v26 = vsel %vm93_vm3, %v229_v21, %v231_v25  ;;  %v1493_v46 = vld [vmem:[%s2226_s6 + $0x134] sm:$0xf0]  ;;  %v1197_v48 = vld [vmem:[%s2226_s6 + $0x20] sm:$0xf]  ;;  %v1459_v49 = vld [vmem:[%s2226_s6 + $0x24] sm:$0xf0] }
  0x3a   :  { %321 = vmatpush.bf16.msra.mxu2 %v1441_v22  ;;  %v233_v0 = vsel %vm95_vm4, %v229_v21, %v232_v26  ;;  %v526_v3 = vsel %vm89_vm1, %v525_v2, %v521_v62  ;;  %v1451_v21 = vld [vmem:[%s2223_s10 + $0x24] sm:$0xf0]  ;;  %v1176_v22 = vor.u32 %v1452_v13, %v1173_v17  ;;  %v1366_v62 = vor.u32 %v1501_v59, %v1365_v57  ;;  %v1285_v17 = vld [vmem:[%s2226_s6 + $0xd0] sm:$0xf]  ;;  %v1261_v19 = vld [vmem:[%s2226_s6 + $0xa0] sm:$0xf] }
  0x3b   :  { %v527_v5 = vsel %vm91_vm2, %v525_v2, %v526_v3  ;;  %v1467_v3 = vld [vmem:[%s2226_s6 + $0x64] sm:$0xf0]  ;;  %v1381_v56 = vld [vmem:[%s2226_s6 + $0x190] sm:$0xf]  ;;  %v1505_v57 = vld [vmem:[%s2226_s6 + $0x194] sm:$0xf0] }
  0x3c   :  { %v528_v6 = vsel %vm93_vm3, %v525_v2, %v527_v5  ;;  %418 = vmatpush.bf16.msrb.mxu1 %v1176_v22  ;;  %v1349_v22 = vld [vmem:[%s2226_s6 + $0x150] sm:$0xf]  ;;  %v1475_v52 = vld [vmem:[%s2226_s6 + $0xa4] sm:$0xf0]  ;;  %v1457_v59 = vld [vmem:[%s2226_s6 + $0x14] sm:$0xf0] }
  0x3d   :  { %v529_v7 = vsel %vm95_vm4, %v525_v2, %v528_v6  ;;  %v1229_v2 = vld [vmem:[%s2226_s6 + $0x60] sm:$0xf]  ;;  %v1483_v6 = vld [vmem:[%s2226_s6 + $0xe4] sm:$0xf0]  ;;  %v1262_v60 = vor.u32 %v1475_v52, %v1261_v19  ;;  %v1510_v43 = vld [vmem:[%s2226_s6 + $0x1c4] sm:$0xf] }
  0x3e   :  { %322 = vmatpush.bf16.msra.mxu2 %v1440_v24  ;;  %v1165_v24 = vld [vmem:[%s2223_s10 + $0x28] sm:$0xf0]  ;;  %v1230_v5 = vor.u32 %v1467_v3, %v1229_v2  ;;  %v1491_v55 = vld [vmem:[%s2226_s6 + $0x124] sm:$0xf0]  ;;  %v1253_v3 = vld [vmem:[%s2226_s6 + $0x90] sm:$0xf] }
  0x3f   :  { %v1168_v25 = vor.u32 %v1450_v23, %v1165_v24  ;;  %v1497_v23 = vld [vmem:[%s2226_s6 + $0x154] sm:$0xf0]  ;;  %v1405_v24 = vld [vmem:[%s2226_s6 + $0x1c0] sm:$0xf]  ;;  %v1460_v52 = vld [vmem:[%s2226_s6 + $0x34] sm:$0xf] }
  0x40   :  { %949 = vmatpush.bf16.msrb.mxu0 %v1230_v5  ;;  %v1317_v5 = vld [vmem:[%s2226_s6 + $0x110] sm:$0xf] }
  0x41   :  { %419 = vmatpush.bf16.msrb.mxu1 %v1168_v25  ;;  %v1213_v25 = vld [vmem:[%s2226_s6 + $0x40] sm:$0xf] }
  0x42   :  { %323 = vmatpush.bf16.msra.mxu2 %v1439_v29 }
  0x45   :  { %420 = vmatpush.bf16.msrb.mxu1 %v1160_v47  ;;  %v1389_v47 = vld [vmem:[%s2226_s6 + $0x1a0] sm:$0xf] }
  0x46   :  { %324 = vmatpush.bf16.msra.mxu2 %v1438_v30 }
  0x49   :  { %421 = vmatpush.bf16.msrb.mxu1 %v1152_v54  ;;  %v1198_v54 = vor.u32 %v1459_v49, %v1197_v48  ;;  %v1508_v49 = vld [vmem:[%s2226_s6 + $0x1b4] sm:$0xf] }
  0x4a   :  { %987 = vmatpush.bf16.msrb.mxu2 %v1430_v15  ;;  %v1507_v15 = vld [vmem:[%s2226_s6 + $0x1a4] sm:$0xf0] }
  0x4b   :  { %v1390_v51 = vor.u32 %v1507_v15, %v1389_v47 }
  0x4e   :  { %988 = vmatpush.bf16.msrb.mxu2 %v1422_v63 }
  0x87   :  { %v110_v1 = vpop.permute.xlu0 %109 }
  0x88   :  { %113 = vst.msk [vmem:[#allocation2] sm:$0x3] %vm112_vm10, %v110_v1  ;;  %v1164_v1 = vor.u32 %v1451_v21, %v1163_v20  ;;  %v1481_v20 = vld [vmem:[%s2226_s6 + $0xd4] sm:$0xf0]  ;;  %v1222_v21 = vor.u32 %v1465_v16, %v1221_v11  ;;  %v1516_v11 = vld [vmem:[%s2226_s6 + $0x1f4] sm:$0xf] }
  0x8a   :  { %406 = vmatpush.bf16.msra.mxu3 %v1164_v1  ;;  %v1511_v1 = vld [vmem:[%s2226_s6 + $0x1c4] sm:$0xf0]  ;;  %950 = vmatpush.bf16.msrb.mxu0 %v1222_v21 }
  0x8e   :  { %407 = vmatpush.bf16.msra.mxu3 %v1156_v44  ;;  %v1333_v44 = vld [vmem:[%s2226_s6 + $0x130] sm:$0xf] }
  0x8f   :  { %v114_v27 = vld [vmem:[#allocation2] sm:$0x3]  ;;  %v1334_v50 = vor.u32 %v1493_v46, %v1333_v44  ;;  %v1407_v44 = vld [vmem:[%s2226_s6 + $0x1c8] sm:$0xf0] }
  0x90   :  { %236 = vst.msk [vmem:[#allocation2] sm:$0x3] %vm235_vm11, %v233_v0  ;;  %v115_v28 = vpack.c.bf16 %v114_v27, %v114_v27  ;;  %v1215_v46 = vld [vmem:[%s2226_s6 + $0x48] sm:$0xf0] }
  0x92   :  { %1107 = vmatmul.msk.bf16.vlgmr.msra.gmra.mxu0 %vm132_vm12, %v115_v28  ;;  %408 = vmatpush.bf16.msra.mxu3 %v1148_v53  ;;  %v1325_v53 = vld [vmem:[%s2226_s6 + $0x120] sm:$0xf] }
  0x93   :  { %v1326_v61 = vor.u32 %v1491_v55, %v1325_v53 }
  0x96   :  { %961 = vmatpush.bf16.msrb.mxu3 %v1302_v58  ;;  %v1189_v58 = vld [vmem:[%s2226_s6 + $0x10] sm:$0xf] }
  0x97   :  { %v1190_v2 = vor.u32 %v1457_v59, %v1189_v58  ;;  %v1391_v58 = vld [vmem:[%s2226_s6 + $0x1a8] sm:$0xf0]  ;;  %v1458_v59 = vld [vmem:[%s2226_s6 + $0x24] sm:$0xf] }
  0x9c   :  { %v247_v4 = vpop.permute.xlu0 %246 }
  0x9d   :  { %250 = vst.msk [vmem:[#allocation2] sm:$0x3] %vm249_vm13, %v247_v4  ;;  %v1293_v4 = vld [vmem:[%s2226_s6 + $0xe0] sm:$0xf] }
  0xa4   :  { %v251_v8 = vld [vmem:[#allocation2] sm:$0x3] }
  0xa5   :  { %v252_v32 = vpack.c.bf16 %v251_v8, %v251_v8  ;;  %531 = vst [vmem:[#allocation2] sm:$0xf] %v529_v7  ;;  %v1357_v7 = vld [vmem:[%s2226_s6 + $0x160] sm:$0xf]  ;;  %v1499_v8 = vld [vmem:[%s2226_s6 + $0x164] sm:$0xf0] }
  0xa6   :  { %v1358_v12 = vor.u32 %v1499_v8, %v1357_v7  ;;  %v1489_v7 = vld [vmem:[%s2226_s6 + $0x114] sm:$0xf0]  ;;  %v1373_v8 = vld [vmem:[%s2226_s6 + $0x180] sm:$0xf] }
  0xa7   :  { %325 = vmatmul.bf16.vlgmr.msra.gmra.mxu2 %v252_v32  ;;  %v1294_v32 = vor.u32 %v1483_v6, %v1293_v4  ;;  %v1473_v4 = vld [vmem:[%s2226_s6 + $0x94] sm:$0xf0] }
  0xa8   :  { %v1254_v6 = vor.u32 %v1473_v4, %v1253_v3  ;;  %v1456_v4 = vld [vmem:[%s2226_s6 + $0x14] sm:$0xf] }
  0xa9   :  { %962 = vmatpush.bf16.msrb.mxu3 %v1294_v32  ;;  %v1503_v32 = vld [vmem:[%s2226_s6 + $0x184] sm:$0xf0] }
  0xac   :  { %v549_v9 = vld [vmem:[#allocation2] sm:$0xff] }
  0xad   :  { %551 = vst [vmem:[#allocation1] ss:$4 sm:$0xff] %v549_v9  ;;  %v1413_v9 = vld [vmem:[%s2226_s6 + $0x1d0] sm:$0xf] }
  0xae   :  { %v1414_v13 = vor.u32 %v1513_v10, %v1413_v9  ;;  %v1318_v9 = vor.u32 %v1489_v7, %v1317_v5  ;;  %v1374_v10 = vor.u32 %v1503_v32, %v1373_v8  ;;  %v1191_v5 = vld [vmem:[%s2226_s6 + $0x18] sm:$0xf0]  ;;  %v1502_v7 = vld [vmem:[%s2226_s6 + $0x184] sm:$0xf]  ;;  %v1375_v8 = vld [vmem:[%s2226_s6 + $0x188] sm:$0xf0] }
  0xaf   :  { %v1378_v32 = vor.u32 %v1502_v7, %v1375_v8  ;;  %v1470_v7 = vld [vmem:[%s2226_s6 + $0x84] sm:$0xf]  ;;  %v1247_v8 = vld [vmem:[%s2226_s6 + $0x88] sm:$0xf0] }
  0xb0   :  { %989 = vmatpush.bf16.msrb.mxu2 %v1414_v13  ;;  %v1181_v13 = vld [vmem:[%s2226_s6] sm:$0xf] }
  0xb4   :  { %v555_v15 = vld.sshfl [vmem:[#allocation1 + $0x18] sm:$0xff pattern:$0x73625140]  ;;  %v552_v19 = vld.sshfl [vmem:[#allocation1] sm:$0xff pattern:$0x73625140] }
  0xb5   :  { %v563_v48 = vpack.c.bf16 %v555_v15, %v555_v15  ;;  %v560_v53 = vpack.c.bf16 %v552_v19, %v552_v19  ;;  %v553_v15 = vld.sshfl [vmem:[#allocation1 + $0x8] sm:$0xff pattern:$0x73625140]  ;;  %v1492_v19 = vld [vmem:[%s2226_s6 + $0x134] sm:$0xf] }
 0x10f   :  { %v145_v26 = vpop.f32.mrf.mxu0 }
 0x110   :  { %v149_v0 = vsub.f32 0.0, %v145_v26  ;;  %v1463_v26 = vld [vmem:[%s2226_s6 + $0x44] sm:$0xf0] }
 0x112   :  { %v150_v27 = vmul.f32 1.442695, %v149_v0  ;;  %v1286_v0 = vor.u32 %v1481_v20, %v1285_v17  ;;  %v1455_v20 = vld [vmem:[%s2226_s6 + $0x4] sm:$0xf0] }
 0x113   :  { %v1182_v21 = vor.u32 %v1455_v20, %v1181_v13  ;;  %v1367_v20 = vld [vmem:[%s2226_s6 + $0x178] sm:$0xf0] }
 0x114   :  { %1523 = vpow2.f32 %v150_v27  ;;  %v1350_v27 = vor.u32 %v1497_v23, %v1349_v22  ;;  %963 = vmatpush.bf16.msrb.mxu3 %v1286_v0  ;;  %v1468_v22 = vld [vmem:[%s2226_s6 + $0x74] sm:$0xf]  ;;  %v1239_v23 = vld [vmem:[%s2226_s6 + $0x78] sm:$0xf0]  ;;  %v1487_v0 = vld [vmem:[%s2226_s6 + $0x104] sm:$0xf0] }
 0x117   :  { %v147_v28 = vpop.f32.mrf.mxu0 }
 0x118   :  { %v1406_v28 = vor.u32 %v1511_v1, %v1405_v24  ;;  %v1245_v24 = vld [vmem:[%s2226_s6 + $0x80] sm:$0xf]  ;;  %v1242_v1 = vor.u32 %v1468_v22, %v1239_v23 }
 0x119   :  { %v336_v23 = vld [vmem:[%s2227_s4] sm:$0xf] }
 0x11a   :  { %v1524_v29 = vpop.eup %1523  ;;  %990 = vmatpush.bf16.msrb.mxu2 %v1406_v28 }
 0x11b   :  { %v152_v30 = vadd.f32 1.0, %v1524_v29  ;;  %v1277_v29 = vld [vmem:[%s2226_s6 + $0xc0] sm:$0xf] }
 0x11d   :  { %1525 = vrcp.f32 %v152_v30  ;;  %v1479_v30 = vld [vmem:[%s2226_s6 + $0xc4] sm:$0xf0] }
 0x123   :  { %v1526_v31 = vpop.eup %1525 }
 0x124   :  { %v157_v34 = vrot.slane %v1526_v31, 1  ;;  %v158_v35 = vperm.slane %v1526_v31, 0  ;;  %v166_v36 = vpack.c.bf16 %v1526_v31, %v1526_v31  ;;  %v1341_v31 = vld [vmem:[%s2226_s6 + $0x140] sm:$0xf] }
 0x126   :  { %v159_v38 = vperm.slane %v157_v34, 0  ;;  %v162_v39 = vmul.f32 %v158_v35, %v154_v33  ;;  %1112 = vmatmul.msk.bf16.vlgmr.msra.gmra.mxu1 %vm175_vm14, %v166_v36  ;;  %v1214_v33 = vor.u32 %v1463_v26, %v1213_v25  ;;  %v1495_v34 = vld [vmem:[%s2226_s6 + $0x144] sm:$0xf0]  ;;  %v1397_v35 = vld [vmem:[%s2226_s6 + $0x1b0] sm:$0xf] }
 0x127   :  { %974 = vmatpush.bf16.msra.mxu1 %v1366_v62  ;;  %v1509_v36 = vld [vmem:[%s2226_s6 + $0x1b4] sm:$0xf0]  ;;  %v1382_v62 = vor.u32 %v1505_v57, %v1381_v56  ;;  %v1471_v25 = vld [vmem:[%s2226_s6 + $0x84] sm:$0xf0]  ;;  %v1309_v26 = vld [vmem:[%s2226_s6 + $0x100] sm:$0xf] }
 0x128   :  { %v163_v40 = vmul.f32 %v159_v38, %v155_v37  ;;  %164 = vst.msk [vmem:[%s2225_s13] sm:$0xf] %vm44_vm0, %v162_v39  ;;  %v1205_v37 = vld [vmem:[%s2226_s6 + $0x30] sm:$0xf]  ;;  %v1461_v38 = vld [vmem:[%s2226_s6 + $0x34] sm:$0xf0]  ;;  %v1278_v39 = vor.u32 %v1479_v30, %v1277_v29  ;;  %v1398_v41 = vor.u32 %v1509_v36, %v1397_v35  ;;  %951 = vmatpush.bf16.msrb.mxu0 %v1214_v33 }
 0x129   :  { %v1206_v14 = vor.u32 %v1461_v38, %v1205_v37  ;;  %v1310_v28 = vor.u32 %v1487_v0, %v1309_v26  ;;  %v1514_v29 = vld [vmem:[%s2226_s6 + $0x1e4] sm:$0xf]  ;;  %v1423_v30 = vld [vmem:[%s2226_s6 + $0x1e8] sm:$0xf0]  ;;  %v1512_v37 = vld [vmem:[%s2226_s6 + $0x1d4] sm:$0xf] }
 0x12a   :  { %165 = vst.msk [vmem:[%s2225_s13 + $0x4] sm:$0xf] %vm44_vm0, %v163_v40  ;;  %v1342_v40 = vor.u32 %v1495_v34, %v1341_v31  ;;  %v1916_v45 = vpop.f32.mrf.mxu2  ;;  %964 = vmatpush.bf16.msrb.mxu3 %v1278_v39  ;;  %991 = vmatpush.bf16.msrb.mxu2 %v1398_v41  ;;  %v1466_v31 = vld [vmem:[%s2226_s6 + $0x64] sm:$0xf]  ;;  %v1231_v33 = vld [vmem:[%s2226_s6 + $0x68] sm:$0xf0]  ;;  %v1426_v35 = vor.u32 %v1514_v29, %v1423_v30 }
 0x12b   :  { %975 = vmatpush.bf16.msra.mxu1 %v1358_v12  ;;  %v1431_v12 = vld [vmem:[%s2226_s6 + $0x1f8] sm:$0xf0]  ;;  %v330_v16 = vsub.f32 0.0, %v1916_v45  ;;  %v1234_v36 = vor.u32 %v1466_v31, %v1231_v33  ;;  %v1410_v45 = vor.u32 %v1510_v43, %v1407_v44  ;;  %v1506_v57 = vld [vmem:[%s2226_s6 + $0x1a4] sm:$0xf]  ;;  %vm1069_vm0 = vcmask 1040384  }
 0x12c   :  { %952 = vmatpush.bf16.msrb.mxu0 %v1206_v14  ;;  %v1434_v17 = vor.u32 %v1516_v11, %v1431_v12  ;;  %v1415_v38 = vld [vmem:[%s2226_s6 + $0x1d8] sm:$0xf0]  ;;  %v1462_v14 = vld [vmem:[%s2226_s6 + $0x44] sm:$0xf]  ;;  %v1484_v12 = vld [vmem:[%s2226_s6 + $0xf4] sm:$0xf] }
 0x12d   :  { %v331_v34 = vmul.f32 1.442695, %v330_v16  ;;  %v1418_v39 = vor.u32 %v1512_v37, %v1415_v38  ;;  %v1223_v41 = vld [vmem:[%s2226_s6 + $0x58] sm:$0xf0]  ;;  %v1218_v47 = vor.u32 %v1462_v14, %v1215_v46  ;;  %v1295_v26 = vld [vmem:[%s2226_s6 + $0xe8] sm:$0xf0] }
 0x12e   :  { %965 = vmatpush.bf16.msrb.mxu3 %v1270_v18  ;;  %992 = vmatpush.bf16.msrb.mxu2 %v1390_v51  ;;  %v1399_v18 = vld [vmem:[%s2226_s6 + $0x1b8] sm:$0xf0]  ;;  %v1498_v29 = vld [vmem:[%s2226_s6 + $0x164] sm:$0xf]  ;;  %v1359_v30 = vld [vmem:[%s2226_s6 + $0x168] sm:$0xf0] }
 0x12f   :  { %976 = vmatpush.bf16.msra.mxu1 %v1350_v27  ;;  %v1246_v27 = vor.u32 %v1471_v25, %v1245_v24  ;;  %1527 = vpow2.f32 %v331_v34  ;;  %v1402_v51 = vor.u32 %v1508_v49, %v1399_v18  ;;  %v1303_v16 = vld [vmem:[%s2226_s6 + $0xf8] sm:$0xf0]  ;;  %v1482_v25 = vld [vmem:[%s2226_s6 + $0xe4] sm:$0xf]  ;;  %v1480_v37 = vld [vmem:[%s2226_s6 + $0xd4] sm:$0xf] }
 0x130   :  { %953 = vmatpush.bf16.msrb.mxu0 %v1198_v54  ;;  %v1207_v54 = vld [vmem:[%s2226_s6 + $0x38] sm:$0xf0]  ;;  %v1306_v24 = vor.u32 %v1484_v12, %v1303_v16  ;;  %v337_v31 = vld [vmem:[%s2227_s4 + $0x4] sm:$0xf]  ;;  %v1279_v14 = vld [vmem:[%s2226_s6 + $0xc8] sm:$0xf0] }
 0x131   :  { %v1210_v55 = vor.u32 %v1460_v52, %v1207_v54  ;;  %v1287_v38 = vld [vmem:[%s2226_s6 + $0xd8] sm:$0xf0]  ;;  %v1494_v46 = vld [vmem:[%s2226_s6 + $0x144] sm:$0xf] }
 0x132   :  { %v328_v63 = vpop.f32.mrf.mxu2  ;;  %966 = vmatpush.bf16.msrb.mxu3 %v1262_v60  ;;  %993 = vmatpush.bf16.msrb.mxu2 %v1382_v62  ;;  %v1394_v60 = vor.u32 %v1506_v57, %v1391_v58  ;;  %v1290_v43 = vor.u32 %v1480_v37, %v1287_v38  ;;  %v554_v18 = vld.sshfl [vmem:[#allocation1 + $0x10] sm:$0xff pattern:$0x73625140]  ;;  %v1335_v52 = vld [vmem:[%s2226_s6 + $0x138] sm:$0xf0] }
 0x133   :  { %977 = vmatpush.bf16.msra.mxu1 %v1342_v40  ;;  %v1464_v40 = vld [vmem:[%s2226_s6 + $0x54] sm:$0xf]  ;;  %v562_v54 = vpack.c.bf16 %v554_v18, %v554_v18  ;;  %v1474_v57 = vld [vmem:[%s2226_s6 + $0xa4] sm:$0xf]  ;;  %v1263_v58 = vld [vmem:[%s2226_s6 + $0xa8] sm:$0xf0] }
 0x134   :  { %954 = vmatpush.bf16.msrb.mxu0 %v1190_v2  ;;  %v1226_v42 = vor.u32 %v1464_v40, %v1223_v41  ;;  %v1504_v63 = vld [vmem:[%s2226_s6 + $0x194] sm:$0xf]  ;;  %v1383_v2 = vld [vmem:[%s2226_s6 + $0x198] sm:$0xf0] }
 0x135   :  { %v1386_v3 = vor.u32 %v1504_v63, %v1383_v2  ;;  %v1496_v40 = vld [vmem:[%s2226_s6 + $0x154] sm:$0xf]  ;;  %v1351_v41 = vld [vmem:[%s2226_s6 + $0x158] sm:$0xf0] }
 0x136   :  { %967 = vmatpush.bf16.msrb.mxu3 %v1254_v6  ;;  %994 = vmatpush.bf16.msrb.mxu2 %v1374_v10  ;;  %v1194_v6 = vor.u32 %v1456_v4, %v1191_v5  ;;  %v1183_v10 = vld [vmem:[%s2226_s6 + $0x8] sm:$0xf0]  ;;  %v1354_v44 = vor.u32 %v1496_v40, %v1351_v41  ;;  %v1472_v63 = vld [vmem:[%s2226_s6 + $0x94] sm:$0xf]  ;;  %v1255_v2 = vld [vmem:[%s2226_s6 + $0x98] sm:$0xf0] }
 0x137   :  { %978 = vmatpush.bf16.msra.mxu1 %v1334_v50  ;;  %v1528_v50 = vpop.eup %1527  ;;  %v1319_v4 = vld [vmem:[%s2226_s6 + $0x118] sm:$0xf0]  ;;  %v1258_v5 = vor.u32 %v1472_v63, %v1255_v2 }
 0x138   :  { %955 = vmatpush.bf16.msrb.mxu0 %v1182_v21  ;;  %v333_v56 = vadd.f32 1.0, %v1528_v50  ;;  %v1476_v50 = vld [vmem:[%s2226_s6 + $0xb4] sm:$0xf] }
 0x139   :  { %995 = vmatmul.bf16.vlgmr.msrb.gmra.mxu2 %v563_v48 }
 0x13a   :  { %1039 = vmatpush.bf16.msra.mxu2 %v1434_v17  ;;  %968 = vmatpush.bf16.msrb.mxu3 %v1246_v27  ;;  %1529 = vrcp.f32 %v333_v56  ;;  %v1500_v17 = vld [vmem:[%s2226_s6 + $0x174] sm:$0xf]  ;;  %v1338_v56 = vor.u32 %v1492_v19, %v1335_v52 }
 0x13b   :  { %979 = vmatpush.bf16.msra.mxu1 %v1326_v61  ;;  %956 = vmatmul.bf16.vlgmr.msrb.gmra.mxu0 %v560_v53  ;;  %v1199_v61 = vld [vmem:[%s2226_s6 + $0x28] sm:$0xf0] }
 0x13c   :  { %1000 = vmatpush.bf16.msra.mxu0 %v1242_v1  ;;  %v1202_v62 = vor.u32 %v1458_v59, %v1199_v61  ;;  %v1370_v1 = vor.u32 %v1500_v17, %v1367_v20  ;;  %v1490_v59 = vld [vmem:[%s2226_s6 + $0x124] sm:$0xf]  ;;  %v1266_v61 = vor.u32 %v1474_v57, %v1263_v58  ;;  %v1065_v58 = vld [vmem:[%s2229_s3 + $0x8] sm:$0xff] }
 0x13e   :  { %1040 = vmatpush.bf16.msra.mxu2 %v1426_v35  ;;  %v1298_v35 = vor.u32 %v1482_v25, %v1295_v26 }
 0x13f   :  { %980 = vmatpush.bf16.msra.mxu1 %v1318_v9  ;;  %v1454_v9 = vld [vmem:[%s2226_s6 + $0x4] sm:$0xf] }
 0x140   :  { %1001 = vmatpush.bf16.msra.mxu0 %v1234_v36  ;;  %v1530_v11 = vpop.eup %1529  ;;  %v1186_v13 = vor.u32 %v1454_v9, %v1183_v10  ;;  %v1362_v36 = vor.u32 %v1498_v29, %v1359_v30  ;;  %v1311_v9 = vld [vmem:[%s2226_s6 + $0x108] sm:$0xf0]  ;;  %v1250_v10 = vor.u32 %v1470_v7, %v1247_v8 }
 0x142   :  { %1041 = vmatpush.bf16.msra.mxu2 %v1418_v39 }
 0x143   :  { %981 = vmatpush.bf16.msra.mxu1 %v1310_v28 }
 0x144   :  { %1002 = vmatpush.bf16.msra.mxu0 %v1226_v42 }
 0x146   :  { %1042 = vmatpush.bf16.msra.mxu2 %v1410_v45  ;;  %v1478_v45 = vld [vmem:[%s2226_s6 + $0xc4] sm:$0xf] }
 0x148   :  { %1003 = vmatpush.bf16.msra.mxu0 %v1218_v47  ;;  %v1343_v47 = vld [vmem:[%s2226_s6 + $0x148] sm:$0xf0] }
 0x149   :  { %v1346_v49 = vor.u32 %v1494_v46, %v1343_v47 }
 0x14a   :  { %1043 = vmatpush.bf16.msra.mxu2 %v1402_v51  ;;  %v1271_v51 = vld [vmem:[%s2226_s6 + $0xb8] sm:$0xf0] }
 0x14c   :  { %1004 = vmatpush.bf16.msra.mxu0 %v1210_v55  ;;  %v1274_v55 = vor.u32 %v1476_v50, %v1271_v51 }
 0x14e   :  { %1044 = vmatpush.bf16.msra.mxu2 %v1394_v60  ;;  %v1327_v60 = vld [vmem:[%s2226_s6 + $0x128] sm:$0xf0] }
 0x150   :  { %1005 = vmatpush.bf16.msra.mxu0 %v1202_v62  ;;  %v1330_v62 = vor.u32 %v1490_v59, %v1327_v60 }
 0x152   :  { %1045 = vmatpush.bf16.msra.mxu2 %v1386_v3  ;;  %v1488_v3 = vld [vmem:[%s2226_s6 + $0x114] sm:$0xf] }
 0x154   :  { %1006 = vmatpush.bf16.msra.mxu0 %v1194_v6  ;;  %v1322_v6 = vor.u32 %v1488_v3, %v1319_v4 }
 0x156   :  { %1046 = vmatpush.bf16.msra.mxu2 %v1378_v32  ;;  %v1486_v32 = vld [vmem:[%s2226_s6 + $0x104] sm:$0xf] }
 0x158   :  { %1007 = vmatpush.bf16.msra.mxu0 %v1186_v13 }
 0x159   :  { %1047 = vmatmul.bf16.vlgmr.msra.gmra.mxu2 %v563_v48  ;;  %v1282_v48 = vor.u32 %v1478_v45, %v1279_v14 }
 0x15b   :  { %1008 = vmatmul.bf16.vlgmr.msra.gmra.mxu0 %v560_v53  ;;  %v561_v53 = vpack.c.bf16 %v553_v15, %v553_v15 }
 0x1a3   :  { %v188_v21 = vpop.f32.mrf.mxu1 }
 0x1a4   :  { %v335_v22 = vmul.f32 %v1530_v11, %v188_v21  ;;  %v1314_v11 = vor.u32 %v1486_v32, %v1311_v9 }
 0x1a6   :  { %v339_v0 = vrot.slane %v335_v22, 1  ;;  %v340_v27 = vperm.slane %v335_v22, 0  ;;  %v348_v28 = vpack.c.bf16 %v335_v22, %v335_v22 }
 0x1a8   :  { %v341_v33 = vperm.slane %v339_v0, 0  ;;  %v344_v34 = vmul.f32 %v340_v27, %v336_v23  ;;  %1177 = vmatmul.msk.bf16.vlgmr.msra.gmra.mxu3 %vm397_vm15, %v348_v28  ;;  %1178 = vmatmul.msk.bf16.vlgmr.msrb.gmra.mxu1 %vm397_vm15, %v348_v28 }
 0x1a9   :  { %1013 = vmatpush.bf16.msra.mxu3 %v1306_v24  ;;  %1026 = vmatpush.bf16.msrb.mxu1 %v1370_v1 }
 0x1aa   :  { %v345_v39 = vmul.f32 %v341_v33, %v337_v31  ;;  %346 = vst.msk [vmem:[%s2228_s12] sm:$0xf] %vm194_vm7, %v344_v34 }
 0x1ab   :  { %v190_v42 = vpop.f32.mrf.mxu1 }
 0x1ac   :  { %347 = vst.msk [vmem:[%s2228_s12 + $0x4] sm:$0xf] %vm194_vm7, %v345_v39 }
 0x1ad   :  { %1014 = vmatpush.bf16.msra.mxu3 %v1298_v35  ;;  %1027 = vmatpush.bf16.msrb.mxu1 %v1362_v36 }
 0x1b1   :  { %1015 = vmatpush.bf16.msra.mxu3 %v1290_v43  ;;  %1028 = vmatpush.bf16.msrb.mxu1 %v1354_v44 }
 0x1b5   :  { %1016 = vmatpush.bf16.msra.mxu3 %v1282_v48  ;;  %1029 = vmatpush.bf16.msrb.mxu1 %v1346_v49 }
 0x1b8   :  { %969 = vmatmul.bf16.vlgmr.msrb.gmra.mxu3 %v561_v53  ;;  %982 = vmatmul.bf16.vlgmr.msra.gmra.mxu1 %v562_v54  ;;  %v957_v12 = vpop.f32.mrf.mxu0 }
 0x1b9   :  { %1017 = vmatpush.bf16.msra.mxu3 %v1274_v55  ;;  %1030 = vmatpush.bf16.msrb.mxu1 %v1338_v56 }
 0x1bc   :  { %v996_v13 = vpop.f32.mrf.mxu2 }
 0x1bd   :  { %1018 = vmatpush.bf16.msra.mxu3 %v1266_v61  ;;  %1031 = vmatpush.bf16.msrb.mxu1 %v1330_v62 }
 0x1c0   :  { %v959_v16 = vpop.f32.mrf.mxu0 }
 0x1c1   :  { %1019 = vmatpush.bf16.msra.mxu3 %v1258_v5  ;;  %1032 = vmatpush.bf16.msrb.mxu1 %v1322_v6 }
 0x1c4   :  { %v998_v17 = vpop.f32.mrf.mxu2 }
 0x1c5   :  { %1020 = vmatpush.bf16.msra.mxu3 %v1250_v10  ;;  %1033 = vmatpush.bf16.msrb.mxu1 %v1314_v11 }
 0x1c8   :  { %1021 = vmatmul.bf16.vlgmr.msra.gmra.mxu3 %v561_v53  ;;  %1034 = vmatmul.bf16.vlgmr.msrb.gmra.mxu1 %v562_v54  ;;  %v1064_v54 = vld [vmem:[%s2229_s3] sm:$0xff] }
 0x1d8   :  { %v1009_v20 = vpop.f32.mrf.mxu0 }
 0x1dc   :  { %v1048_v22 = vpop.f32.mrf.mxu2 }
 0x1e0   :  { %v1011_v24 = vpop.f32.mrf.mxu0 }
 0x1e4   :  { %v1050_v25 = vpop.f32.mrf.mxu2 }
 0x225   :  { %v423_v21 = vpop.f32.mrf.mxu1 }
 0x22b   :  { %v410_v23 = vpop.f32.mrf.mxu3 }
 0x22d   :  { %v425_v1 = vpop.f32.mrf.mxu1 }
 0x233   :  { %v412_v26 = vpop.f32.mrf.mxu3 }
 0x235   :  { %v983_v0 = vpop.f32.mrf.mxu1 }
 0x23b   :  { %v970_v27 = vpop.f32.mrf.mxu3 }
 0x23c   :  { %v971_v28 = vadd.f32 %v970_v27, %v957_v12 }
 0x23d   :  { %v985_v29 = vpop.f32.mrf.mxu1 }
 0x23e   :  { %v984_v30 = vadd.f32 %v983_v0, %v971_v28 }
 0x240   :  { %v997_v33 = vadd.f32 %v996_v13, %v984_v30 }
 0x242   :  { %v1052_v35 = vsub.f32 0.0, %v997_v33 }
 0x243   :  { %v972_v31 = vpop.f32.mrf.mxu3 }
 0x244   :  { %v1054_v38 = vmul.f32 1.442695, %v1052_v35 }
 0x245   :  { %v1035_v34 = vpop.f32.mrf.mxu1 }
 0x246   :  { %1531 = vpow2.f32 %v1054_v38 }
 0x24b   :  { %v1022_v36 = vpop.f32.mrf.mxu3 }
 0x24c   :  { %v1023_v37 = vadd.f32 %v1022_v36, %v1009_v20  ;;  %v1532_v45 = vpop.eup %1531 }
 0x24d   :  { %v1037_v39 = vpop.f32.mrf.mxu1  ;;  %v1058_v14 = vadd.f32 1.0, %v1532_v45 }
 0x24e   :  { %v1036_v40 = vadd.f32 %v1035_v34, %v1023_v37 }
 0x250   :  { %v1049_v41 = vadd.f32 %v1048_v22, %v1036_v40 }
 0x252   :  { %v1053_v42 = vsub.f32 0.0, %v1049_v41 }
 0x253   :  { %v1024_v43 = vpop.f32.mrf.mxu3 }
 0x254   :  { %v1056_v44 = vmul.f32 1.442695, %v1053_v42 }
 0x256   :  { %1533 = vpow2.f32 %v1056_v44 }
 0x257   :  { %1535 = vrcp.f32 %v1058_v14 }
 0x25c   :  { %v1534_v46 = vpop.eup %1533 }
 0x25d   :  { %v1059_v47 = vadd.f32 1.0, %v1534_v46  ;;  %v1536_v15 = vpop.eup %1535 }
 0x25e   :  { %v1062_v18 = vmul.f32 %v1536_v15, %v410_v23 }
 0x25f   :  { %1537 = vrcp.f32 %v1059_v47 }
 0x265   :  { %v1538_v48 = vpop.eup %1537 }
 0x266   :  { %v1063_v49 = vmul.f32 %v1538_v48, %v423_v21 }
 0x268   :  { %v1068_v50 = vrot.slane %v1063_v49, 7 }
 0x26a   :  { %v1070_v51 = vsel %vm1069_vm0, %v1062_v18, %v1068_v50  ;;  %v1071_v19 = vsel %vm89_vm1, %v1062_v18, %v1068_v50 }
 0x26b   :  { %v1072_v52 = vrot.slane %v1071_v19, 1  ;;  %v1074_v53 = vperm.slane %v1070_v51, 1  ;;  %v1073_v55 = vperm.slane %v1070_v51, 0 }
 0x26d   :  { %v1076_v56 = vperm.slane %v1072_v52, 1  ;;  %v1077_v57 = vrot.slane %v1074_v53, 4  ;;  %v1075_v59 = vperm.slane %v1072_v52, 0 }
 0x26f   :  { %v1078_v60 = vrot.slane %v1076_v56, 4  ;;  %v1079_v61 = vsel %vm442_vm5, %v1073_v55, %v1077_v57 }
 0x270   :  { %v1083_v62 = vmul.f32 %v1079_v61, %v1064_v54 }
 0x271   :  { %v1080_v63 = vsel %vm442_vm5, %v1075_v59, %v1078_v60 }
 0x272   :  { %v1084_v2 = vmul.f32 %v1080_v63, %v1065_v58  ;;  %1085 = vst [vmem:[%s2230_s11] sm:$0xff] %v1083_v62 }
 0x274   :  { %1086 = vst [vmem:[%s2230_s11 + $0x8] sm:$0xff] %v1084_v2 }

</bundles_post_ra>
